<compile_context>
chip_gen: v6e
topology: v6e:2x2x1
jax: 0.10.0
libtpu: 0.0.40
codegen_flags: <defaults>
</compile_context>

<pallas_src>
import functools

import jax
import jax.numpy as jnp
from jax import lax
from jax.experimental import pallas as pl
from jax.experimental.pallas import tpu as pltpu


def _cdiv(a, b):
    return -(-a // b)


def _round_up(x, m):
    return ((x + m - 1) // m) * m


def _largest_group(d, n, max_lanes=128):
    """Largest g with g | d and g*n <= max_lanes (so the reshape stays free)."""
    gmax = max(1, max_lanes // max(n, 1))
    for g in range(min(gmax, d), 0, -1):
        if d % g == 0:
            return g
    return 1


def _make_gram_kernel(m_rows, tm, k_ext, need_mask):
    """Kernel over grid (splits, B, k_ext): accumulate the packed (L, L) gram."""

    def kernel(x_ref, g_ref):
        k = pl.program_id(2)

        @pl.when(k == 0)
        def _init():
            g_ref[...] = jnp.zeros_like(g_ref)

        x = x_ref[0]                                   # (tm, L), streamed dtype
        if need_mask:
            # Ragged last block / phantom blocks: zero rows past the end of the
            # array instead of padding the input tensor in HBM.
            start = (pl.program_id(0) * k_ext + k) * tm
            row = lax.broadcasted_iota(jnp.int32, x.shape, 0)
            x = jnp.where(row < (m_rows - start), x, jnp.zeros_like(x))

        # Packed gram: contract the row (sublane) axis of the tile with itself.
        # f32 accumulation on the MXU regardless of the streamed dtype.
        g_ref[0, 0] += lax.dot_general(
            x, x, (((0,), (0,)), ((), ())),
            preferred_element_type=jnp.float32)

    return kernel


@functools.partial(jax.jit, static_argnames=("block_rows", "splits"))
def pairwise_dist(inp, block_rows=None, splits=2):
    """inp: (B, D, n) -> (B, n, n) f32 Euclidean distance matrices."""
    assert inp.ndim == 3
    if inp.dtype not in (jnp.bfloat16, jnp.float32):
        inp = inp.astype(jnp.float32)          # bf16 / f32 stream through as-is
    B, D, n = inp.shape

    # ---- free lane-dense re-layout: (B, D, n) -> (B, M, L), L = g*n <= 128 ----
    g = _largest_group(D, n)
    L = g * n
    M = D // g
    x = inp.reshape(B, M, L)        # contiguous row-major => metadata-only

    # ---- row-tile size: big tiles amortize the ~0.35us/step grid overhead ----
    itemsize = inp.dtype.itemsize
    lanes_pad = _round_up(L, 128)
    if block_rows is None:
        target_bytes = 8 * 1024 * 1024          # per double-buffered input tile
        block_rows = max(8, (target_bytes // (lanes_pad * itemsize)) // 8 * 8)
    tm = min(block_rows, M)
    if tm < M:
        tm = max(8, (tm // 8) * 8)              # sublane-aligned unless full dim

    n_blocks = _cdiv(M, tm)
    s_eff = max(1, min(splits, n_blocks))       # v7x: split rows across 2 TCs
    k_ext = _cdiv(n_blocks, s_eff)
    need_mask = (s_eff * k_ext * tm != M)
    has_phantom = (s_eff * k_ext != n_blocks)

    def x_index(c, b, k):
        idx = c * k_ext + k
        if has_phantom:
            # Phantom blocks (uneven core split) are fully masked in the kernel;
            # clamping just keeps the prefetch DMA in bounds.
            idx = jnp.minimum(idx, n_blocks - 1)
        return (b, idx, 0)

    gram_packed = pl.pallas_call(
        _make_gram_kernel(M, tm, k_ext, need_mask),
        out_shape=jax.ShapeDtypeStruct((s_eff, B, L, L), jnp.float32),
        grid_spec=pltpu.PrefetchScalarGridSpec(
            num_scalar_prefetch=0,
            grid=(s_eff, B, k_ext),
            in_specs=[pl.BlockSpec((1, tm, L), x_index)],
            out_specs=pl.BlockSpec((1, 1, L, L), lambda c, b, k: (c, b, 0, 0)),
        ),
        compiler_params=pltpu.CompilerParams(
            dimension_semantics=("parallel", "parallel", "arbitrary"),
            # 48 MiB fits v7x's 64 MiB physical VMEM; v5e/v6e have 128 MiB.
            vmem_limit_bytes=48 * 1024 * 1024,
        ),
    )(x)

    # ---- tiny finalize in plain JAX (kept out of the hot pipelined body) ----
    gp = gram_packed.sum(axis=0).reshape(B, g, n, g, n)
    # True gram = sum of the g diagonal (n, n) blocks of the packed gram.
    gram = jnp.einsum("baicj,ac->bij", gp, jnp.eye(g, dtype=jnp.float32))
    sq = jnp.diagonal(gram, axis1=1, axis2=2)              # (B, n)  ||x_i||^2
    d2 = sq[:, :, None] + sq[:, None, :] - 2.0 * gram
    eye_n = jnp.eye(n, dtype=bool)[None]
    d2 = jnp.where(eye_n, 0.0, jnp.maximum(d2, 0.0))       # exact 0 self-dist
    return jnp.sqrt(d2)


def get_krum(inp, f):
    """inp: (B, D, n).  Returns (krum, mkrum), each (B, D, 1).  Port of getKrum()."""
    B, D, n = inp.shape
    if not (2 * f + 2 < n):
        raise ValueError(
            "Not a valid set of the number of poison clients and honest clients")
    k = n - f - 2

    cdist = pairwise_dist(inp)                              # (B, n, n)

    # TODO(synk): torch.topk / argmin / fancy-index gather are tiny O(n^2 log n)
    # ops with no clean Mosaic lowering; kept as plain-JAX glue on tiny tensors.
    neg_vals, nbh = lax.top_k(-cdist, k + 1)                # k+1 smallest
    nbh_dist = -neg_vals                                    # (B, n, k+1)
    scores = jnp.sum(nbh_dist, axis=2)                      # (B, n)

    # torch.argmin with no dim flattens -> flat index (well-defined for B == 1,
    # exactly like the reference module).
    i_star = jnp.argmin(scores.reshape(-1))

    krum = jnp.take(inp, i_star[None], axis=2)              # (B, D, 1)
    sel = nbh[:, i_star, :].reshape(-1)                     # (B*(k+1),)
    mkrum = jnp.mean(jnp.take(inp, sel, axis=2), axis=2, keepdims=True)
    return krum, mkrum


@functools.partial(jax.jit, static_argnames=("f", "mode"))
def net_forward(inp, f, mode="mkrum"):
    assert mode in ("krum", "mkrum")
    krum, mkrum = get_krum(inp, f)
    return krum if mode == "krum" else mkrum


if __name__ == "__main__":
    key = jax.random.PRNGKey(0)
    k1, k2, k3 = jax.random.split(key, 3)

    def cdist_ref(x):                                       # reference (direct)
        xt = jnp.transpose(x, (0, 2, 1)).astype(jnp.float32)
        diff = xt[:, :, None, :] - xt[:, None, :, :]
        return jnp.sqrt(jnp.sum(diff * diff, axis=-1))

    # 1) multi-block accumulation + 2-core split + ragged-tail mask path.
    B1, D1, n1 = 2, 1024, 10                 # g=8, L=80, M=128; tm=40 -> 4 blocks
    x1 = jax.random.normal(k1, (B1, D1, n1), dtype=jnp.float32)
    ref1 = cdist_ref(x1)
    d1 = jax.block_until_ready(pairwise_dist(x1, block_rows=40, splits=2))
    assert jnp.allclose(d1, ref1, rtol=1e-3, atol=1e-2)

    # 1b) odd block count -> phantom block on core 1 (clamped + fully masked).
    d1b = jax.block_until_ready(pairwise_dist(x1, block_rows=48, splits=2))
    assert jnp.allclose(d1b, ref1, rtol=1e-3, atol=1e-2)

    # 2) default params (single large lane-dense block per batch).
    d2 = jax.block_until_ready(pairwise_dist(x1))
    assert jnp.allclose(d2, ref1, rtol=1e-3, atol=1e-2)

    # 3) awkward (prime) D -> g == 1 lane-sparse fallback, still no pad copy.
    x3 = jax.random.normal(k2, (1, 257, 6), dtype=jnp.float32)
    d3 = jax.block_until_ready(pairwise_dist(x3))
    assert jnp.allclose(d3, cdist_ref(x3), rtol=1e-3, atol=1e-2)

    # 4) bf16 streaming path (f32 accumulation on the MXU).
    d4 = jax.block_until_ready(pairwise_dist(x1.astype(jnp.bfloat16)))
    assert jnp.allclose(d4, ref1, rtol=5e-2, atol=5e-1)

    # 5) end-to-end multi-Krum forward; B=1 (flat-argmin semantics of the ref),
    #    D=96 vector dim, n=10 clients, f=2 poison clients (2f+2=6 < n).
    B, D, n, f = 1, 96, 10, 2
    inp = jax.random.normal(k3, (B, D, n), dtype=jnp.float32)
    out = jax.block_until_ready(net_forward(inp, f, mode="mkrum"))
    assert out.shape == (B, D, 1) and out.dtype == jnp.float32
    out_k = jax.block_until_ready(net_forward(inp, f, mode="krum"))
    assert out_k.shape == (B, D, 1)

    print("KERNEL_OK")
</pallas_src>

<mosaic_0001>
module attributes {stable_mosaic.version = 11 : i64} {
  func.func @kernel(%arg0: i32, %arg1: i32, %arg2: i32, %arg3: memref<1x40x80xf32, #tpu.memory_space<vmem>>, %arg4: memref<1x1x80x80xf32, #tpu.memory_space<vmem>>) attributes {dimension_semantics = [#tpu.dimension_semantics<parallel>, #tpu.dimension_semantics<parallel>, #tpu.dimension_semantics<arbitrary>], iteration_bounds = array<i64: 2, 2, 2>, scalar_prefetch = 0 : i64, scratch_operands = 0 : i64, tpu.core_type = #tpu.core_type<tc>, window_params = [{transform_indices = @transform_0, window_bounds = array<i64: 1, 40, 80>}, {transform_indices = @transform_1, window_bounds = array<i64: 1, 1, 80, 80>}]} {
    %c0_i32 = arith.constant 0 : i32
    %0 = arith.cmpi eq, %arg2, %c0_i32 : i32
    %1 = arith.extui %0 : i1 to i32
    %c0_i32_0 = arith.constant 0 : i32
    %2 = arith.cmpi ne, %1, %c0_i32_0 : i32
    scf.if %2 {
      %cst_12 = arith.constant 0.000000e+00 : f32
      %21 = vector.broadcast %cst_12 : f32 to vector<1x1x80x80xf32>
      %c0_13 = arith.constant 0 : index
      %c0_14 = arith.constant 0 : index
      %c0_15 = arith.constant 0 : index
      %c0_16 = arith.constant 0 : index
      %22 = vector.load %arg4[%c0_13, %c0_14, %c0_15, %c0_16] : memref<1x1x80x80xf32, #tpu.memory_space<vmem>>, vector<1x1x80x80xf32>
      tpu.vector_store %arg4[%c0_13, %c0_14, %c0_15, %c0_16], %21 {strides = array<i32>} : memref<1x1x80x80xf32, #tpu.memory_space<vmem>>, vector<1x1x80x80xf32>,
    } else {
    }
    %c0 = arith.constant 0 : index
    %c0_1 = arith.constant 0 : index
    %c0_2 = arith.constant 0 : index
    %3 = vector.load %arg3[%c0, %c0_1, %c0_2] : memref<1x40x80xf32, #tpu.memory_space<vmem>>, vector<1x40x80xf32>
    %4 = vector.shape_cast %3 : vector<1x40x80xf32> to vector<40x80xf32>
    %c2_i32 = arith.constant 2 : i32
    %5 = arith.muli %arg0, %c2_i32 : i32
    %6 = arith.addi %5, %arg2 : i32
    %c40_i32 = arith.constant 40 : i32
    %7 = arith.muli %6, %c40_i32 : i32
    %8 = tpu.iota {dimensions = array<i32: 0>} : vector<40x80xi32>
    %c128_i32 = arith.constant 128 : i32
    %9 = arith.subi %c128_i32, %7 : i32
    %10 = vector.broadcast %9 : i32 to vector<40x80xi32>
    %11 = arith.cmpi slt, %8, %10 : vector<40x80xi32>
    %cst = arith.constant 0.000000e+00 : f32
    %12 = vector.broadcast %cst : f32 to vector<40x80xf32>
    %13 = arith.select %11, %4, %12 : vector<40x80xi1>, vector<40x80xf32>
    %c0_3 = arith.constant 0 : index
    %c0_4 = arith.constant 0 : index
    %c0_5 = arith.constant 0 : index
    %c0_6 = arith.constant 0 : index
    %14 = vector.load %arg4[%c0_3, %c0_4, %c0_5, %c0_6] : memref<1x1x80x80xf32, #tpu.memory_space<vmem>>, vector<1x1x80x80xf32>
    %15 = vector.shape_cast %14 : vector<1x1x80x80xf32> to vector<80x80xf32>
    %cst_7 = arith.constant dense<0.000000e+00> : vector<80x80xf32>
    %16 = tpu.matmul %13, %13, %cst_7 {dimension_numbers = #tpu.dot_dimension_numbers<[0], [0], [1], [1], [0, 1, 1, 1], [], []>} : vector<40x80xf32>, vector<40x80xf32>, vector<80x80xf32> -> vector<80x80xf32>
    %17 = arith.addf %15, %16 : vector<80x80xf32>
    %c0_8 = arith.constant 0 : index
    %c0_9 = arith.constant 0 : index
    %c0_10 = arith.constant 0 : index
    %c0_11 = arith.constant 0 : index
    %18 = vector.load %arg4[%c0_8, %c0_9, %c0_10, %c0_11] : memref<1x1x80x80xf32, #tpu.memory_space<vmem>>, vector<1x1x80x80xf32>
    %19 = vector.shape_cast %18 : vector<1x1x80x80xf32> to vector<80x80xf32>
    %20 = vector.shape_cast %17 : vector<80x80xf32> to vector<1x1x80x80xf32>
    tpu.vector_store %arg4[%c0_8, %c0_9, %c0_10, %c0_11], %20 {strides = array<i32>} : memref<1x1x80x80xf32, #tpu.memory_space<vmem>>, vector<1x1x80x80xf32>,
    return
  }
  func.func @transform_0(%arg0: i32, %arg1: i32, %arg2: i32) -> (i32, i32, i32) {
    %c2_i32 = arith.constant 2 : i32
    %0 = arith.muli %arg0, %c2_i32 : i32
    %1 = arith.addi %0, %arg2 : i32
    %c0_i32 = arith.constant 0 : i32
    %c0_i32_0 = arith.constant 0 : i32
    return %arg1, %1, %c0_i32 : i32, i32, i32
  }
  func.func @transform_1(%arg0: i32, %arg1: i32, %arg2: i32) -> (i32, i32, i32, i32) {
    %c0_i32 = arith.constant 0 : i32
    %c0_i32_0 = arith.constant 0 : i32
    %c0_i32_1 = arith.constant 0 : i32
    return %arg0, %arg1, %c0_i32, %c0_i32_0 : i32, i32, i32, i32
  }
}

</mosaic_0001>

<bundles_post_ra>
// kernel: pairwise_dist.1
= control target key start
LH: loop header
LB: loop body
LE: loop exit
PB: predicated region body
PF: predicated region fallthrough
CT: control target
= control target key end

     0   :  { %s751_s6 = smov 0   ;;  %s753_s7 = smov 0   ;;  %s962_s0 = inlined_call_operand.vmem [shape: f32[2,128,80], index: 0, kind: input, shape index: {}]   ;;  %s963_s1 = inlined_call_operand.vmem [shape: f32[2,2,80,80], index: 1, kind: output, shape index: {}]  }
   0x1   :  { %s755_s8 = smov 0   ;;  %s757_s9 = smov 0  }
   0x2   :  { %s759_s10 = smov 0   ;;  %s761_s11 = smov 0  }
   0x3   :  { %s763_s12 = smov 0  }
   0x4 LB: > { %s23_s13 = sadd.s32 1, %s726_s9  ;;  %s26_s14 = sadd.s32 1, %s730_s10  ;;  %s738_s12 = sphi %s763_s12, %s11_s12   ;;  %s734_s11 = sphi %s761_s11, %s979_s11   ;;  %s730_s10 = sphi %s759_s10, %s978_s10   ;;  %s726_s9 = sphi %s757_s9, %s977_s9   ;;  %s722_s8 = sphi %s755_s8, %s976_s8   ;;  %s718_s7 = sphi %s753_s7, %s975_s7   ;;  %s714_s6 = sphi %s751_s6, %s974_s6  }
   0x5   : > { %p24_p0 = scmp.ge.s32.totalorder %s23_s13, 2  ;;  %p550_p1 = scmp.ge.s32.totalorder %s738_s12, 1 }
   0x6   : > { %p131_p2 = scmp.lt.s32.totalorder %s738_s12, 9  ;;  %s30_s15 = sadd.s32 1, %s734_s11 }
   0x7   : > { %s981_s13 = smov (%p24_p0, %s23_s13), 0  ;;  %s983_s14 = smov (!%p24_p0, %s26_s14), %s730_s10 }
   0x8   : > { %p132_p3 = pnand %p550_p1, %p131_p2  ;;  %p28_p4 = scmp.ge.s32.totalorder %s983_s14, 2 }
   0x9   : > { %s551_s16 = sshll.u32 (!%p132_p3), %s722_s8, 1  ;;  %p172_p6 = scmp.lt.s32.totalorder (!%p132_p3), %s718_s7, 1 }
   0xa   : > { %s985_s14 = smov (%p28_p4, %s983_s14), 0  ;;  %s987_s15 = smov (!%p28_p4, %s30_s15), %s734_s11 }
   0xb   : > { %p32_p5 = scmp.ge.s32.totalorder %s987_s15, 2  ;;  %135 = sbr.rel (%p132_p3) target bundleno = 395 (0x18b), region = 24 }
   0xc   : > { %s799_s17 = sadd.s32 (!%p132_p3), %s714_s6, %s551_s16  ;;  %p187_p7 = scmp.lt.s32.totalorder (!%p132_p3), %s722_s8, 1 }
   0xd   : > { %s989_s15 = smov (%p32_p5, %s987_s15), 0  ;;  %s167_s18 = smul.u32 (!%p132_p3), 5, %s799_s17 }
   0xe   : > { %p555_p9 = scmp.ne.s32.totalorder (!%p132_p3), %s714_s6, 0 }
   0xf   : > { %p174_p8 = scmp.lt.s32.totalorder (!%p132_p3), %s167_s18, 15 }
  0x10   : > { %s991_s7 = smov (!%p172_p6, %s718_s7), 1  ;;  %s995_s8 = smov (!%p187_p7, %s722_s8), 1 }
  0x11   : > { %s552_s19 = sshll.u32 %s991_s7, 4  ;;  %s624_s20 = smul.u32 10, %s991_s7 }
  0x12   : > { %s993_s18 = smov (!%p174_p8, %s167_s18), 15  ;;  %s625_s23 = smul.u32 20, %s995_s8 }
  0x13   : > { %s177_s21 = sadd.s32 %s552_s19, %s993_s18  ;;  %199 = sbr.rel (%p555_p9) target bundleno = 30 (0x1e), region = 28 }
  0x14   : > { %s553_s22 = sshll.u32 %s177_s21, 3  ;;  %s193_s27 = sadd.s32 %s625_s23, %s624_s20 }
  0x15   : > { %s807_s26 = scalar_lea.vmem %s962_s0, %s553_s22  ;;  %s554_s28 = sshll.u32 %s193_s27, 3 }
  0x16   : > { %s812_s2 = scalar_lea.vmem %s963_s1, %s554_s28 }
  0x18   : > { %vm200_vm0 = vcmask 654336   ;;  %v740_v0 = vmov 0.0  }
  0x19   : > { %201 = vst.msk [vmem:[%s812_s2] sm:$0xff] %vm200_vm0, %v740_v0  ;;  %202 = vst.msk [vmem:[%s812_s2 + $0x8] sm:$0xff] %vm200_vm0, %v740_v0 }
  0x1a   : > { %203 = vst.msk [vmem:[%s812_s2 + $0x10] sm:$0xff] %vm200_vm0, %v740_v0  ;;  %204 = vst.msk [vmem:[%s812_s2 + $0x18] sm:$0xff] %vm200_vm0, %v740_v0 }
  0x1b   : > { %205 = vst.msk [vmem:[%s812_s2 + $0x20] sm:$0xff] %vm200_vm0, %v740_v0  ;;  %206 = vst.msk [vmem:[%s812_s2 + $0x28] sm:$0xff] %vm200_vm0, %v740_v0 }
  0x1c   : > { %207 = vst.msk [vmem:[%s812_s2 + $0x30] sm:$0xff] %vm200_vm0, %v740_v0  ;;  %208 = vst.msk [vmem:[%s812_s2 + $0x38] sm:$0xff] %vm200_vm0, %v740_v0 }
  0x1d   : > { %209 = vst.msk [vmem:[%s812_s2 + $0x40] sm:$0xff] %vm200_vm0, %v740_v0  ;;  %210 = vst.msk [vmem:[%s812_s2 + $0x48] sm:$0xff] %vm200_vm0, %v740_v0 }
  0x1e PF: > { %s218_s3 = smul.u32 40, %s799_s17  ;;  %v219_v1 = vlaneseq  ;;  %v211_v2 = vld [vmem:[%s807_s26] sm:$0xff]  ;;  %v212_v6 = vld [vmem:[%s807_s26 + $0x8] sm:$0xff]  ;;  %v213_v16 = vld [vmem:[%s807_s26 + $0x10] sm:$0xff]  ;;  %vm279_vm6 = vcmask 326656   ;;  %vm435_vm7 = vcmask 654336  }
  0x1f   : > { %v215_v14 = vld [vmem:[%s807_s26 + $0x20] sm:$0xff]  ;;  %v214_v18 = vld [vmem:[%s807_s26 + $0x18] sm:$0xff] }
  0x20   : > { %v220_v3 = vshrl.u32 %v219_v1, 7  ;;  %s225_s4 = ssub.s32 128, %s218_s3  ;;  %v238_v33 = vld [vmem:[%s812_s2 + $0x8] sm:$0xff]  ;;  %v237_v35 = vld [vmem:[%s812_s2] sm:$0xff] }
  0x21   : > { %v226_v4 = vstv %s225_s4  ;;  %v240_v39 = vld [vmem:[%s812_s2 + $0x18] sm:$0xff]  ;;  %v239_v41 = vld [vmem:[%s812_s2 + $0x10] sm:$0xff] }
  0x22   : > { %vm827_vm1 = vcmp.lt.s32.totalorder %v220_v3, %v226_v4  ;;  %v221_v7 = vadd.s32 8, %v220_v3  ;;  %v222_v8 = vadd.s32 16, %v220_v3  ;;  %v223_v10 = vadd.s32 24, %v220_v3  ;;  %v242_v45 = vld [vmem:[%s812_s2 + $0x28] sm:$0xff]  ;;  %v241_v47 = vld [vmem:[%s812_s2 + $0x20] sm:$0xff] }
  0x23   : > { %v232_v9 = vsel %vm827_vm1, %v211_v2, 0.0  ;;  %v224_v11 = vadd.s32 32, %v220_v3  ;;  %v244_v51 = vld [vmem:[%s812_s2 + $0x38] sm:$0xff]  ;;  %v243_v53 = vld [vmem:[%s812_s2 + $0x30] sm:$0xff] }
  0x24   : > { %247 = vxpose.xlu0.b32.start [1/5] (short) (narrow) %v232_v9, 80  ;;  %vm834_vm2 = vcmp.lt.s32.totalorder %v221_v7, %v226_v4  ;;  %vm846_vm4 = vcmp.lt.s32.totalorder %v222_v8, %v226_v4  ;;  %vm855_vm5 = vcmp.lt.s32.totalorder %v223_v10, %v226_v4  ;;  %v246_v57 = vld [vmem:[%s812_s2 + $0x48] sm:$0xff]  ;;  %v245_v59 = vld [vmem:[%s812_s2 + $0x40] sm:$0xff] }
  0x25   : > { %v233_v13 = vsel %vm834_vm2, %v212_v6, 0.0  ;;  %vm841_vm3 = vcmp.lt.s32.totalorder %v224_v11, %v226_v4  ;;  %v234_v20 = vsel %vm846_vm4, %v213_v16, 0.0  ;;  %v235_v21 = vsel %vm855_vm5, %v214_v18, 0.0 }
  0x26   : > { %589 = vmatprep.subr.msk.mxu0 %vm841_vm3, %v215_v14  ;;  %614 = vmatprep.subr.msk.mxu1 %vm841_vm3, %v215_v14  ;;  %v236_v22 = vsel %vm841_vm3, %v215_v14, 0.0 }
  0x27   : > { %590 = vmatpush3.msk.msra.mxu0 %vm841_vm3, %v215_v14  ;;  %619 = vmatpush3.msk.msra.mxu1 %vm841_vm3, %v215_v14 }
  0x28   : > { %248 = vxpose.xlu0.b32.cont [2/5] (short) (narrow) %v233_v13, 80  ;;  %591 = vmatprep.subr.msk.mxu0 %vm855_vm5, %v214_v18 }
  0x29   : > { %592 = vmatpush3.msk.msra.mxu0 %vm855_vm5, %v214_v18  ;;  %615 = vmatprep.subr.msk.mxu1 %vm855_vm5, %v214_v18 }
  0x2a   : > { %593 = vmatprep.subr.msk.mxu0 %vm846_vm4, %v213_v16  ;;  %620 = vmatpush3.msk.msra.mxu1 %vm855_vm5, %v214_v18 }
  0x2b   : > { %594 = vmatpush3.msk.msra.mxu0 %vm846_vm4, %v213_v16  ;;  %616 = vmatprep.subr.msk.mxu1 %vm846_vm4, %v213_v16 }
  0x2c   : > { %249 = vxpose.xlu0.b32.cont [3/5] (short) (narrow) %v234_v20, 80  ;;  %595 = vmatprep.subr.msk.mxu0 %vm834_vm2, %v212_v6 }
  0x2d   : > { %596 = vmatpush3.msk.msra.mxu0 %vm834_vm2, %v212_v6  ;;  %621 = vmatpush3.msk.msra.mxu1 %vm846_vm4, %v213_v16 }
  0x2e   : > { %597 = vmatprep.subr.msk.mxu0 %vm827_vm1, %v211_v2  ;;  %617 = vmatprep.subr.msk.mxu1 %vm834_vm2, %v212_v6 }
  0x2f   : > { %598 = vmatpush3.msk.msra.mxu0 %vm827_vm1, %v211_v2  ;;  %622 = vmatpush3.msk.msra.mxu1 %vm834_vm2, %v212_v6 }
  0x30   : > { %250 = vxpose.xlu0.b32.cont [4/5] (short) (narrow) %v235_v21, 80  ;;  %618 = vmatprep.subr.msk.mxu1 %vm827_vm1, %v211_v2 }
  0x31   : > { %623 = vmatpush3.msk.msra.mxu1 %vm827_vm1, %v211_v2 }
  0x34   : > { %251 = vxpose.xlu0.b32.end [5/5] (short) (narrow) %v236_v22, 80 }
  0xa0   : > { %v263_v23 = vpop.trf.xlu0 }
  0xa1   : > { %599 = vmatprep.mubr.msk.f32.mxu0 %vm279_vm6, %v263_v23 }
  0xa4   : > { %v264_v24 = vpop.trf.xlu0 }
  0xa5   : > { %600 = vmatmul.mubr.msk.f32.vlgmr.msra.gmra.mxu0 %vm279_vm6, %v264_v24 }
  0xa8   : > { %v265_v25 = vpop.trf.xlu0 }
  0xa9   : > { %602 = vmatprep.mubr.msk.f32.mxu0 %vm279_vm6, %v265_v25 }
  0xac   : > { %v266_v26 = vpop.trf.xlu0 }
  0xad   : > { %603 = vmatmul.mubr.msk.f32.gmra.mxu0 %vm279_vm6, %v266_v26 }
  0xb0   : > { %v267_v27 = vpop.trf.xlu0 }
  0xb1   : > { %605 = vmatprep.mubr.msk.f32.mxu0 %vm279_vm6, %v267_v27 }
  0xb4   : > { %v268_v28 = vpop.trf.xlu0 }
  0xb5   : > { %606 = vmatmul.mubr.msk.f32.gmra.mxu0 %vm279_vm6, %v268_v28 }
  0xb8   : > { %v269_v29 = vpop.trf.xlu0 }
  0xb9   : > { %608 = vmatprep.mubr.msk.f32.mxu1 %vm279_vm6, %v269_v29 }
  0xbc   : > { %v270_v30 = vpop.trf.xlu0 }
  0xbd   : > { %609 = vmatmul.mubr.msk.f32.vlgmr.msra.gmra.mxu1 %vm279_vm6, %v270_v30 }
  0xc0   : > { %v271_v31 = vpop.trf.xlu0 }
  0xc1   : > { %611 = vmatprep.mubr.msk.f32.mxu1 %vm279_vm6, %v271_v31 }
  0xc4   : > { %v272_v32 = vpop.trf.xlu0 }
  0xc5   : > { %612 = vmatmul.mubr.msk.f32.gmra.mxu1 %vm279_vm6, %v272_v32 }
 0x165   : > { %v601_v34 = vpop.f32.mrf.mxu0 }
 0x166   : > { %v426_v36 = vadd.f32 %v601_v34, %v238_v33 }
 0x167   : > { %v376_v37 = vpop.f32.mrf.mxu0 }
 0x168   : > { %437 = vst.msk [vmem:[%s812_s2 + $0x8] sm:$0xff] %vm435_vm7, %v426_v36  ;;  %v425_v38 = vadd.f32 %v376_v37, %v237_v35 }
 0x16a   : > { %436 = vst.msk [vmem:[%s812_s2] sm:$0xff] %vm435_vm7, %v425_v38 }
 0x16d   : > { %v604_v40 = vpop.f32.mrf.mxu0 }
 0x16e   : > { %v428_v42 = vadd.f32 %v604_v40, %v240_v39 }
 0x16f   : > { %v386_v43 = vpop.f32.mrf.mxu0 }
 0x170   : > { %439 = vst.msk [vmem:[%s812_s2 + $0x18] sm:$0xff] %vm435_vm7, %v428_v42  ;;  %v427_v44 = vadd.f32 %v386_v43, %v239_v41 }
 0x172   : > { %438 = vst.msk [vmem:[%s812_s2 + $0x10] sm:$0xff] %vm435_vm7, %v427_v44 }
 0x175   : > { %v607_v46 = vpop.f32.mrf.mxu0 }
 0x176   : > { %v430_v48 = vadd.f32 %v607_v46, %v242_v45 }
 0x177   : > { %v396_v49 = vpop.f32.mrf.mxu0 }
 0x178   : > { %441 = vst.msk [vmem:[%s812_s2 + $0x28] sm:$0xff] %vm435_vm7, %v430_v48  ;;  %v429_v50 = vadd.f32 %v396_v49, %v241_v47 }
 0x17a   : > { %440 = vst.msk [vmem:[%s812_s2 + $0x20] sm:$0xff] %vm435_vm7, %v429_v50 }
 0x17d   : > { %v610_v52 = vpop.f32.mrf.mxu1 }
 0x17e   : > { %v432_v54 = vadd.f32 %v610_v52, %v244_v51 }
 0x17f   : > { %v406_v55 = vpop.f32.mrf.mxu1 }
 0x180   : > { %443 = vst.msk [vmem:[%s812_s2 + $0x38] sm:$0xff] %vm435_vm7, %v432_v54  ;;  %v431_v56 = vadd.f32 %v406_v55, %v243_v53 }
 0x182   : > { %442 = vst.msk [vmem:[%s812_s2 + $0x30] sm:$0xff] %vm435_vm7, %v431_v56 }
 0x185   : > { %v613_v58 = vpop.f32.mrf.mxu1 }
 0x186   : > { %v434_v60 = vadd.f32 %v613_v58, %v246_v57 }
 0x187   : > { %v416_v61 = vpop.f32.mrf.mxu1 }
 0x188   : > { %445 = vst.msk [vmem:[%s812_s2 + $0x48] sm:$0xff] %vm435_vm7, %v434_v60  ;;  %v433_v62 = vadd.f32 %v416_v61, %v245_v59 }
 0x18a   : > { %444 = vst.msk [vmem:[%s812_s2 + $0x40] sm:$0xff] %vm435_vm7, %v433_v62 }
 0x18b PF: > { %s11_s12 = sadd.s32 1, %s738_s12   ;;  %s974_s6 = smov %s726_s9 }
 0x18c   : > { %p8_p10 = scmp.ge.s32.totalorder %s11_s12, 10   ;;  %s975_s7 = smov %s730_s10 }
 0x18d   : > { %s976_s8 = smov %s734_s11  ;;  %s977_s9 = smov %s981_s13 }
 0x18e   : > { %s978_s10 = smov %s985_s14  ;;  %s979_s11 = smov %s989_s15 }
 0x18f   :  { %10 = sbr.rel (!%p8_p10) target bundleno = 4 (0x4), region = 58 }

</bundles_post_ra>
